<compile_context>
chip_gen: v6e
topology: v6e:2x2x1
jax: 0.10.0
libtpu: 0.0.40
codegen_flags: <defaults>
</compile_context>

<pallas_src>
import math

import jax
import jax.numpy as jnp
from jax.experimental import pallas as pl
from jax.experimental.pallas import tpu as pltpu

LANE = 128  # TPU lane width: output columns are padded to this for dense stores


def mlp_kernel(x_ref, w_ref, b_ref, scale_ref, offset_ref, out_ref):
    # Single collapsed matmul (the 4 Linears are affine -> exactly one dot).
    y = jnp.dot(x_ref[...], w_ref[...], preferred_element_type=jnp.float32)
    y = y + b_ref[...]
    # Sigmoid on the EUP (logistic lowering), epilogue FMA on full vregs.
    y = jax.nn.sigmoid(y)
    out_ref[...] = y * scale_ref[...] + offset_ref[...]


def mlp_forward(x, params, scale, offset, *, tile_n=1024):
    """x: (N, input_size) f32.  Returns (N, output_size) denormalized outputs.

    params: dict with w1..w4 of shape (in, out) and b1..b4 of shape (1, out),
            i.e. y = x @ W + b (equivalent to PyTorch x @ W.T).
    scale, offset: (1, output_size) per-column denormalization.
    """
    n, k = x.shape
    out_size = params["w4"].shape[1]

    # ---- Collapse the activation-free Linear stack (exact, done once in JAX) ----
    w_eff = params["w1"] @ params["w2"] @ params["w3"] @ params["w4"]      # (k, out)
    b_eff = ((params["b1"] @ params["w2"] + params["b2"]) @ params["w3"]
             + params["b3"]) @ params["w4"] + params["b4"]                 # (1, out)

    # ---- Pad output-feature axis to lane width (dense, unmasked stores) ----
    def pad_cols(a):
        return jnp.pad(a, ((0, 0), (0, LANE - a.shape[1])))

    w_p = pad_cols(w_eff.astype(jnp.float32))          # (k, 128)
    b_p = pad_cols(b_eff.astype(jnp.float32))          # (1, 128)
    s_p = pad_cols(scale.astype(jnp.float32))          # (1, 128)
    o_p = pad_cols(offset.astype(jnp.float32))         # (1, 128)

    # ---- Grid over the batch: pad N up to a multiple of the batch tile ----
    tile_n = min(tile_n, -(-n // 8) * 8)               # tile no larger than padded batch
    n_pad = -(-n // tile_n) * tile_n
    x_p = jnp.pad(x.astype(jnp.float32), ((0, n_pad - n), (0, 0)))
    grid = (n_pad // tile_n,)

    out = pl.pallas_call(
        mlp_kernel,
        out_shape=jax.ShapeDtypeStruct((n_pad, LANE), jnp.float32),
        grid=grid,
        in_specs=[
            pl.BlockSpec((tile_n, k), lambda i: (i, 0)),   # x tile (pipelined)
            pl.BlockSpec((k, LANE), lambda i: (0, 0)),     # W_eff (resident)
            pl.BlockSpec((1, LANE), lambda i: (0, 0)),     # b_eff (resident)
            pl.BlockSpec((1, LANE), lambda i: (0, 0)),     # scale (resident)
            pl.BlockSpec((1, LANE), lambda i: (0, 0)),     # offset (resident)
        ],
        out_specs=pl.BlockSpec((tile_n, LANE), lambda i: (i, 0)),
        compiler_params=pltpu.CompilerParams(
            dimension_semantics=("parallel",)),            # shard batch across TCs (v7x)
    )(x_p, w_p, b_p, s_p, o_p)

    return out[:n, :out_size]


def init_params(key, input_size, hidden_size, output_size):
    """Deterministic PyTorch-style Linear init: U(-1/sqrt(fan_in), 1/sqrt(fan_in))."""
    dims = [(input_size, hidden_size),
            (hidden_size, hidden_size),
            (hidden_size, hidden_size),
            (hidden_size, output_size)]
    params = {}
    for i, (fan_in, fan_out) in enumerate(dims, start=1):
        key, kw, kb = jax.random.split(key, 3)
        bound = 1.0 / math.sqrt(fan_in)
        params[f"w{i}"] = jax.random.uniform(
            kw, (fan_in, fan_out), jnp.float32, -bound, bound)
        params[f"b{i}"] = jax.random.uniform(
            kb, (1, fan_out), jnp.float32, -bound, bound)
    return params


if __name__ == "__main__":
    # Small config consistent with the module: cfg.mlp.{input_size, hidden_size, output_size}
    input_size, hidden_size, output_size = 4, 32, 2
    batch = 8  # number of spatial points fed through the MLP

    # cfg.transformations: value ranges used by _denormalize
    transformations = {
        "n": (0.01, 0.3),         # Manning's n range
        "q_spatial": (0.0, 10.0)  # spatial q range (mlp_q branch)
    }
    # TODO(synk): the cfg.train_q / fixed-q branch and Initialization() are
    # host-side configuration (nn.Parameter bookkeeping), not kernel ops.

    key = jax.random.PRNGKey(0)
    key, k_x = jax.random.split(key)
    params = init_params(key, input_size, hidden_size, output_size)

    x = jax.random.uniform(k_x, (batch, input_size), jnp.float32)

    # Per-output-column (scale, offset) for denormalization:
    #   column 0 -> n, column 1 -> q_spatial
    ranges = [transformations["n"], transformations["q_spatial"]]
    scale = jnp.array([[hi - lo for lo, hi in ranges]], jnp.float32)   # (1, output_size)
    offset = jnp.array([[lo for lo, hi in ranges]], jnp.float32)       # (1, output_size)

    out = mlp_forward(x, params, scale, offset)
    out = jax.block_until_ready(out)

    # Equivalent of the PyTorch module's side effects:
    n_param = out[:, 0]  # self.n
    q_param = out[:, 1]  # self.q  (mlp_q branch)

    # Pure-JAX reference check (un-collapsed 4-layer network)
    h = x @ params["w1"] + params["b1"]
    h = h @ params["w2"] + params["b2"]
    h = h @ params["w3"] + params["b3"]
    y = jax.nn.sigmoid(h @ params["w4"] + params["b4"])
    ref = y * scale + offset
    assert out.shape == (batch, output_size)
    assert jnp.allclose(out, ref, atol=1e-4, rtol=1e-4), "mismatch vs reference"
    assert n_param.shape == (batch,) and q_param.shape == (batch,)

    print("KERNEL_OK")
</pallas_src>

<mosaic_0001>
module attributes {stable_mosaic.version = 11 : i64} {
  func.func @mlp_kernel(%arg0: i32, %arg1: memref<8x4xf32, #tpu.memory_space<vmem>>, %arg2: memref<4x128xf32, #tpu.memory_space<vmem>>, %arg3: memref<1x128xf32, #tpu.memory_space<vmem>>, %arg4: memref<1x128xf32, #tpu.memory_space<vmem>>, %arg5: memref<1x128xf32, #tpu.memory_space<vmem>>, %arg6: memref<8x128xf32, #tpu.memory_space<vmem>>) attributes {dimension_semantics = [#tpu.dimension_semantics<parallel>], iteration_bounds = array<i64: 1>, scalar_prefetch = 0 : i64, scratch_operands = 0 : i64, tpu.core_type = #tpu.core_type<tc>, window_params = [{transform_indices = @transform_0, window_bounds = array<i64: 8, 4>}, {pipeline_mode = #tpu.pipeline_mode<synchronous>, transform_indices = @transform_1, window_bounds = array<i64: 4, 128>}, {pipeline_mode = #tpu.pipeline_mode<synchronous>, transform_indices = @transform_2, window_bounds = array<i64: 1, 128>}, {pipeline_mode = #tpu.pipeline_mode<synchronous>, transform_indices = @transform_3, window_bounds = array<i64: 1, 128>}, {pipeline_mode = #tpu.pipeline_mode<synchronous>, transform_indices = @transform_4, window_bounds = array<i64: 1, 128>}, {transform_indices = @transform_5, window_bounds = array<i64: 8, 128>}]} {
    %c0 = arith.constant 0 : index
    %c0_0 = arith.constant 0 : index
    %0 = vector.load %arg1[%c0, %c0_0] : memref<8x4xf32, #tpu.memory_space<vmem>>, vector<8x4xf32>
    %c0_1 = arith.constant 0 : index
    %c0_2 = arith.constant 0 : index
    %1 = vector.load %arg2[%c0_1, %c0_2] : memref<4x128xf32, #tpu.memory_space<vmem>>, vector<4x128xf32>
    %cst = arith.constant dense<0.000000e+00> : vector<8x128xf32>
    %2 = tpu.matmul %0, %1, %cst {dimension_numbers = #tpu.dot_dimension_numbers<[1], [0], [0], [1], [0, 0, 1, 1], [], []>} : vector<8x4xf32>, vector<4x128xf32>, vector<8x128xf32> -> vector<8x128xf32>
    %c0_3 = arith.constant 0 : index
    %c0_4 = arith.constant 0 : index
    %3 = vector.load %arg3[%c0_3, %c0_4] : memref<1x128xf32, #tpu.memory_space<vmem>>, vector<1x128xf32>
    %4 = vector.broadcast %3 : vector<1x128xf32> to vector<8x128xf32>
    %5 = arith.addf %2, %4 : vector<8x128xf32>
    %6 = arith.negf %5 : vector<8x128xf32>
    %7 = math.exp %6 : vector<8x128xf32>
    %cst_5 = arith.constant 1.000000e+00 : f32
    %8 = vector.broadcast %cst_5 : f32 to vector<8x128xf32>
    %9 = arith.addf %8, %7 : vector<8x128xf32>
    %10 = arith.divf %8, %9 : vector<8x128xf32>
    %c0_6 = arith.constant 0 : index
    %c0_7 = arith.constant 0 : index
    %11 = vector.load %arg4[%c0_6, %c0_7] : memref<1x128xf32, #tpu.memory_space<vmem>>, vector<1x128xf32>
    %12 = vector.broadcast %11 : vector<1x128xf32> to vector<8x128xf32>
    %13 = arith.mulf %10, %12 : vector<8x128xf32>
    %c0_8 = arith.constant 0 : index
    %c0_9 = arith.constant 0 : index
    %14 = vector.load %arg5[%c0_8, %c0_9] : memref<1x128xf32, #tpu.memory_space<vmem>>, vector<1x128xf32>
    %15 = vector.broadcast %14 : vector<1x128xf32> to vector<8x128xf32>
    %16 = arith.addf %13, %15 : vector<8x128xf32>
    %c0_10 = arith.constant 0 : index
    %c0_11 = arith.constant 0 : index
    %17 = vector.load %arg6[%c0_10, %c0_11] : memref<8x128xf32, #tpu.memory_space<vmem>>, vector<8x128xf32>
    tpu.vector_store %arg6[%c0_10, %c0_11], %16 {strides = array<i32>} : memref<8x128xf32, #tpu.memory_space<vmem>>, vector<8x128xf32>,
    return
  }
  func.func @transform_0(%arg0: i32) -> (i32, i32) {
    %c0_i32 = arith.constant 0 : i32
    %c0_i32_0 = arith.constant 0 : i32
    return %arg0, %c0_i32 : i32, i32
  }
  func.func @transform_1(%arg0: i32) -> (i32, i32) {
    %c0_i32 = arith.constant 0 : i32
    %c0_i32_0 = arith.constant 0 : i32
    %c0_i32_1 = arith.constant 0 : i32
    return %c0_i32, %c0_i32_0 : i32, i32
  }
  func.func @transform_2(%arg0: i32) -> (i32, i32) {
    %c0_i32 = arith.constant 0 : i32
    %c0_i32_0 = arith.constant 0 : i32
    %c0_i32_1 = arith.constant 0 : i32
    return %c0_i32, %c0_i32_0 : i32, i32
  }
  func.func @transform_3(%arg0: i32) -> (i32, i32) {
    %c0_i32 = arith.constant 0 : i32
    %c0_i32_0 = arith.constant 0 : i32
    %c0_i32_1 = arith.constant 0 : i32
    return %c0_i32, %c0_i32_0 : i32, i32
  }
  func.func @transform_4(%arg0: i32) -> (i32, i32) {
    %c0_i32 = arith.constant 0 : i32
    %c0_i32_0 = arith.constant 0 : i32
    %c0_i32_1 = arith.constant 0 : i32
    return %c0_i32, %c0_i32_0 : i32, i32
  }
  func.func @transform_5(%arg0: i32) -> (i32, i32) {
    %c0_i32 = arith.constant 0 : i32
    %c0_i32_0 = arith.constant 0 : i32
    return %arg0, %c0_i32 : i32, i32
  }
}

</mosaic_0001>

<bundles_post_ra>
// kernel: tpu_custom_call.1
= control target key start
LH: loop header
LB: loop body
LE: loop exit
PB: predicated region body
PF: predicated region fallthrough
CT: control target
= control target key end

     0   :  { %vm34_vm0 = vcmask 1043456   ;;  %v187_v2 = vmov 0.0   ;;  %vm188_vm1 = vmmov 0   ;;  %vm30_vm2 = vcmask 31744   ;;  %s238_s0 = inlined_call_operand.vmem [shape: f32[8,4], index: 0, kind: input, shape index: {}]   ;;  %s239_s1 = inlined_call_operand.vmem [shape: f32[4,128], index: 1, kind: input, shape index: {}]   ;;  %s240_s2 = inlined_call_operand.vmem [shape: f32[1,128], index: 2, kind: input, shape index: {}]   ;;  %s241_s3 = inlined_call_operand.vmem [shape: f32[1,128], index: 3, kind: input, shape index: {}]   ;;  %s242_s4 = inlined_call_operand.vmem [shape: f32[1,128], index: 4, kind: input, shape index: {}]   ;;  %s243_s5 = inlined_call_operand.hbm [shape: f32[8,128], index: 5, kind: output, shape index: {}]  }
   0x1   :  { %v22_v0 = vld [vmem:[%s239_s1] sm:$0xf]  ;;  %153 = vmatprep.subr.mxu0 %v187_v2  ;;  %155 = vmatprep.mubr.msk.f32.mxu0 %vm188_vm1, %v187_v2 }
   0x2   :  { %v21_v1 = vld [vmem:[%s238_s0] sm:$0xff] }
   0x3   :  { %10 = vsyncpa [#allocation3], 0  ;;  %154 = vmatpush3.msk.msra.mxu0 %vm34_vm0, %v22_v0  ;;  %v145_v3 = vld [vmem:[%s240_s2] ss:$0 sm:$0xff]  ;;  %s189_s26 = smov [#allocation2]  }
   0x4   :  { %156 = vmatmul.mubr.msk.f32.vlgmr.msra.gmra.mxu0 %vm30_vm2, %v21_v1  ;;  %v149_v10 = vld [vmem:[%s241_s3] ss:$0 sm:$0xff]  ;;  %s137_s27 = sshll.u32 %s189_s26, 4  ;;  %s138_s27 = int_to_ptr.vmem [resolvable:$true] %s137_s27 }
   0x5   :  { %v150_v12 = vld [vmem:[%s242_s4] ss:$0 sm:$0xff]  ;;  %s165_s2 = scalar_lea.vmem %s138_s27, 128  ;;  %p170_p1 = scmp.lt.s32.totalorder %s138_s27, %s138_s27 }
   0x6   :  { %p166_p0 = scmp.ne.s32.totalorder %s138_s27, %s165_s2  ;;  %p171_p2 = scmp.lt.s32.totalorder %s165_s2, %s165_s2 }
   0x8   :  { %p172_p3 = por %p171_p2, %p170_p1 }
   0xa   :  { %p173_p4 = pnand %p172_p3, %p166_p0 }
  0xc4   :  { %v104_v4 = vpop.f32.mrf.mxu0 }
  0xc5   :  { %v105_v5 = vadd.f32 %v145_v3, %v104_v4 }
  0xc6   :  { %v157_v6 = vpop.f32.mrf.mxu0 }
  0xc7   :  { %v148_v7 = vmul.f32 -1.442695, %v105_v5 }
  0xc9   :  { %161 = vpow2.f32 %v148_v7 }
  0xd6   :  { %v162_v8 = vpop.eup %161 }
  0xd7   :  { %v111_v9 = vadd.f32 1.0, %v162_v8 }
  0xd9   :  { %163 = vrcp.f32 %v111_v9 }
  0xe6   :  { %v164_v11 = vpop.eup %163 }
  0xe7   :  { %v121_v13 = vmul.f32 %v164_v11, %v149_v10 }
  0xe9   :  { %v129_v14 = vadd.f32 %v150_v12, %v121_v13 }
  0xeb   :  { %130 = vst [vmem:[#allocation2] sm:$0xff] %v129_v14 }
  0xec   :  { %176 = shalt.err (!%p173_p4)
}
  0xed   :  { %140 = dma.vmem_to_hbm [thread:$0]  %s138_s27, 128, %s243_s5, [#allocation3]  }
  0xee   :  { %185 = dma.done.wait [#allocation3], 128  }
  0xef   :  { %186 = vsyncadd [#allocation3], 4294967168 }
  0xf0   :  { %144 = vsyncpa [#allocation3], 1 }

</bundles_post_ra>
